<compile_context>
chip_gen: v7x
topology: tpu7x:2x2x1
jax: 0.10.0
libtpu: 0.0.40
codegen_flags: <defaults>
</compile_context>

<pallas_src>
import jax
import jax.numpy as jnp
from jax.experimental import pallas as pl
from jax.experimental.pallas import tpu as pltpu


def squeeze_excitation(x_nchw, w1, b1, w2, b2, *, b_tile=None):
    """SqueezeExcitation forward.

    x_nchw: (N, C, H, W)  any float dtype (f32 / bf16); output matches.
    w1: (S, C), b1: (S,)   -- fc1 (1x1 conv) weights, PyTorch layout.
    w2: (C, S), b2: (C,)   -- fc2 (1x1 conv) weights, PyTorch layout.
    """
    N, C, H, W = x_nchw.shape
    S = w1.shape[0]
    HW = H * W

    # Lane-dense last dim: pad spatial extent up to a multiple of 128.
    HWp = max(128, pl.cdiv(HW, 128) * 128)

    # Batch tile: amortize per-step overhead, but keep >= 2 grid steps so the
    # batch axis can shard across both TensorCores on v7x.
    if b_tile is None:
        b_tile = max(1, N // 2)
    grid_n = pl.cdiv(N, b_tile)
    Np = grid_n * b_tile

    x_flat = x_nchw.reshape(N, C, HW)
    if Np != N or HWp != HW:
        # zero padding: does not affect the (sum / true_HW) mean, and padded
        # outputs are sliced off below.
        x_flat = jnp.pad(x_flat, ((0, Np - N), (0, 0), (0, HWp - HW)))

    # Pre-transpose the tiny weights ONCE in the wrapper so the in-kernel
    # squeeze MLP needs no transposes (was 4 XLU transposes per grid step).
    w1t = w1.astype(jnp.float32).T            # (C, S)
    w2t = w2.astype(jnp.float32).T            # (S, C)
    b1r = b1.astype(jnp.float32).reshape(1, S)
    b2r = b2.astype(jnp.float32).reshape(1, C)

    inv_hw = 1.0 / float(HW)                  # divide by TRUE spatial size

    def _se_kernel(x_ref, w1t_ref, b1_ref, w2t_ref, b2_ref, o_ref):
        # x_ref: (b_tile, C, HWp); weights full-resident in VMEM.
        x = x_ref[...].astype(jnp.float32)                       # (b, C, HWp)
        # adaptive_avg_pool2d -> mean over the true spatial extent.
        pooled = jnp.sum(x, axis=-1) * inv_hw                    # (b, C)
        # fc1 (1x1 conv) + SiLU   (pre-transposed weight: no .T here)
        h = jnp.dot(pooled, w1t_ref[...],
                    preferred_element_type=jnp.float32) + b1_ref[...]  # (b, S)
        h = h * jax.nn.sigmoid(h)
        # fc2 (1x1 conv) + Sigmoid
        s = jnp.dot(h, w2t_ref[...],
                    preferred_element_type=jnp.float32) + b2_ref[...]  # (b, C)
        s = jax.nn.sigmoid(s)
        # gate * x, per-channel gate broadcast over spatial (no transpose).
        o_ref[...] = (s[:, :, None] * x).astype(o_ref.dtype)

    out_flat = pl.pallas_call(
        _se_kernel,
        out_shape=jax.ShapeDtypeStruct((Np, C, HWp), x_nchw.dtype),
        grid_spec=pltpu.PrefetchScalarGridSpec(
            num_scalar_prefetch=0,
            grid=(grid_n,),
            in_specs=[
                pl.BlockSpec((b_tile, C, HWp), lambda b: (b, 0, 0)),
                pl.BlockSpec((C, S), lambda b: (0, 0)),
                pl.BlockSpec((1, S), lambda b: (0, 0)),
                pl.BlockSpec((S, C), lambda b: (0, 0)),
                pl.BlockSpec((1, C), lambda b: (0, 0)),
            ],
            out_specs=pl.BlockSpec((b_tile, C, HWp), lambda b: (b, 0, 0)),
        ),
        compiler_params=pltpu.CompilerParams(
            dimension_semantics=("parallel",)),
    )(x_flat, w1t, b1r, w2t, b2r)

    return out_flat[:N, :, :HW].reshape(N, C, H, W)


def _reference(x, w1, b1, w2, b2):
    pooled = jnp.mean(x, axis=(2, 3), keepdims=True)              # (N,C,1,1)
    h = jnp.einsum('ncij,sc->nsij', pooled, w1) + b1[None, :, None, None]
    h = h * jax.nn.sigmoid(h)
    s = jnp.einsum('nsij,cs->ncij', h, w2) + b2[None, :, None, None]
    s = jax.nn.sigmoid(s)
    return s * x


if __name__ == "__main__":
    key = jax.random.PRNGKey(0)
    # Module hyperparams: input_channel=16, expand_channel=32, squeeze_factor=4
    input_channel = 16
    expand_channel = 32
    squeeze_channel = input_channel // 4   # = 4

    k_x, k_w1, k_b1, k_w2, k_b2, k_x2 = jax.random.split(key, 6)

    # Conv2d(expand, squeeze, 1).weight -> (S, C, 1, 1) squeezed to (S, C)
    w1 = jax.random.normal(k_w1, (squeeze_channel, expand_channel),
                           dtype=jnp.float32) * 0.1
    b1 = jax.random.normal(k_b1, (squeeze_channel,), dtype=jnp.float32) * 0.1
    # Conv2d(squeeze, expand, 1).weight -> (C, S, 1, 1) squeezed to (C, S)
    w2 = jax.random.normal(k_w2, (expand_channel, squeeze_channel),
                           dtype=jnp.float32) * 0.1
    b2 = jax.random.normal(k_b2, (expand_channel,), dtype=jnp.float32) * 0.1

    # --- check 1: f32, lane-dense spatial (16x16 = 256 = 2*128) ---------------
    N, C, H, W = 2, expand_channel, 16, 16
    x = jax.random.normal(k_x, (N, C, H, W), dtype=jnp.float32)
    out = jax.block_until_ready(squeeze_excitation(x, w1, b1, w2, b2))
    ref = _reference(x, w1, b1, w2, b2)
    assert out.shape == (N, C, H, W)
    assert jnp.allclose(out, ref, atol=1e-5, rtol=1e-5), "f32 mismatch"

    # --- check 2: bf16 I/O, HW=49 (padded to 128), ragged batch tile ----------
    N2, H2, W2 = 3, 7, 7
    x2 = jax.random.normal(k_x2, (N2, C, H2, W2), dtype=jnp.float32)
    x2_bf = x2.astype(jnp.bfloat16)
    out2 = jax.block_until_ready(
        squeeze_excitation(x2_bf, w1, b1, w2, b2, b_tile=2))
    ref2 = _reference(x2_bf.astype(jnp.float32), w1, b1, w2, b2)
    assert out2.shape == (N2, C, H2, W2)
    assert out2.dtype == jnp.bfloat16
    assert jnp.allclose(out2.astype(jnp.float32), ref2,
                        atol=3e-2, rtol=3e-2), "bf16 mismatch"

    print("KERNEL_OK")
</pallas_src>

<mosaic_0001>
module attributes {stable_mosaic.version = 11 : i64} {
  func.func @_se_kernel(%arg0: i32, %arg1: memref<1x32x256xf32, #tpu.memory_space<vmem>>, %arg2: memref<32x4xf32, #tpu.memory_space<vmem>>, %arg3: memref<1x4xf32, #tpu.memory_space<vmem>>, %arg4: memref<4x32xf32, #tpu.memory_space<vmem>>, %arg5: memref<1x32xf32, #tpu.memory_space<vmem>>, %arg6: memref<1x32x256xf32, #tpu.memory_space<vmem>>) attributes {dimension_semantics = [#tpu.dimension_semantics<parallel>], iteration_bounds = array<i64: 2>, scalar_prefetch = 0 : i64, scratch_operands = 0 : i64, tpu.core_type = #tpu.core_type<tc>, window_params = [{transform_indices = @transform_0, window_bounds = array<i64: 1, 32, 256>}, {pipeline_mode = #tpu.pipeline_mode<synchronous>, transform_indices = @transform_1, window_bounds = array<i64: 32, 4>}, {pipeline_mode = #tpu.pipeline_mode<synchronous>, transform_indices = @transform_2, window_bounds = array<i64: 1, 4>}, {pipeline_mode = #tpu.pipeline_mode<synchronous>, transform_indices = @transform_3, window_bounds = array<i64: 4, 32>}, {pipeline_mode = #tpu.pipeline_mode<synchronous>, transform_indices = @transform_4, window_bounds = array<i64: 1, 32>}, {transform_indices = @transform_5, window_bounds = array<i64: 1, 32, 256>}]} {
    %c0 = arith.constant 0 : index
    %c0_0 = arith.constant 0 : index
    %c0_1 = arith.constant 0 : index
    %0 = vector.load %arg1[%c0, %c0_0, %c0_1] : memref<1x32x256xf32, #tpu.memory_space<vmem>>, vector<1x32x256xf32>
    %cst = arith.constant dense<0.000000e+00> : vector<1x32xf32>
    %1 = vector.multi_reduction <add>, %0, %cst [2] : vector<1x32x256xf32> to vector<1x32xf32>
    %cst_2 = arith.constant 3.906250e-03 : f32
    %2 = vector.broadcast %cst_2 : f32 to vector<1x32xf32>
    %3 = arith.mulf %1, %2 : vector<1x32xf32>
    %c0_3 = arith.constant 0 : index
    %c0_4 = arith.constant 0 : index
    %4 = vector.load %arg2[%c0_3, %c0_4] : memref<32x4xf32, #tpu.memory_space<vmem>>, vector<32x4xf32>
    %cst_5 = arith.constant dense<0.000000e+00> : vector<1x4xf32>
    %5 = tpu.matmul %3, %4, %cst_5 {dimension_numbers = #tpu.dot_dimension_numbers<[1], [0], [0], [1], [0, 0, 1, 1], [], []>} : vector<1x32xf32>, vector<32x4xf32>, vector<1x4xf32> -> vector<1x4xf32>
    %c0_6 = arith.constant 0 : index
    %c0_7 = arith.constant 0 : index
    %6 = vector.load %arg3[%c0_6, %c0_7] : memref<1x4xf32, #tpu.memory_space<vmem>>, vector<1x4xf32>
    %7 = arith.addf %5, %6 : vector<1x4xf32>
    %8 = arith.negf %7 : vector<1x4xf32>
    %9 = math.exp %8 : vector<1x4xf32>
    %cst_8 = arith.constant 1.000000e+00 : f32
    %10 = vector.broadcast %cst_8 : f32 to vector<1x4xf32>
    %11 = arith.addf %10, %9 : vector<1x4xf32>
    %12 = arith.divf %10, %11 : vector<1x4xf32>
    %13 = arith.mulf %7, %12 : vector<1x4xf32>
    %c0_9 = arith.constant 0 : index
    %c0_10 = arith.constant 0 : index
    %14 = vector.load %arg4[%c0_9, %c0_10] : memref<4x32xf32, #tpu.memory_space<vmem>>, vector<4x32xf32>
    %cst_11 = arith.constant dense<0.000000e+00> : vector<1x32xf32>
    %15 = tpu.matmul %13, %14, %cst_11 {dimension_numbers = #tpu.dot_dimension_numbers<[1], [0], [0], [1], [0, 0, 1, 1], [], []>} : vector<1x4xf32>, vector<4x32xf32>, vector<1x32xf32> -> vector<1x32xf32>
    %c0_12 = arith.constant 0 : index
    %c0_13 = arith.constant 0 : index
    %16 = vector.load %arg5[%c0_12, %c0_13] : memref<1x32xf32, #tpu.memory_space<vmem>>, vector<1x32xf32>
    %17 = arith.addf %15, %16 : vector<1x32xf32>
    %18 = arith.negf %17 : vector<1x32xf32>
    %19 = math.exp %18 : vector<1x32xf32>
    %cst_14 = arith.constant 1.000000e+00 : f32
    %20 = vector.broadcast %cst_14 : f32 to vector<1x32xf32>
    %21 = arith.addf %20, %19 : vector<1x32xf32>
    %22 = arith.divf %20, %21 : vector<1x32xf32>
    %23 = vector.shape_cast %22 : vector<1x32xf32> to vector<1x32x1xf32>
    %24 = vector.broadcast %23 : vector<1x32x1xf32> to vector<1x32x256xf32>
    %25 = arith.mulf %24, %0 : vector<1x32x256xf32>
    %c0_15 = arith.constant 0 : index
    %c0_16 = arith.constant 0 : index
    %c0_17 = arith.constant 0 : index
    %26 = vector.load %arg6[%c0_15, %c0_16, %c0_17] : memref<1x32x256xf32, #tpu.memory_space<vmem>>, vector<1x32x256xf32>
    tpu.vector_store %arg6[%c0_15, %c0_16, %c0_17], %25 {strides = array<i32>} : memref<1x32x256xf32, #tpu.memory_space<vmem>>, vector<1x32x256xf32>,
    return
  }
  func.func @transform_0(%arg0: i32) -> (i32, i32, i32) {
    %c0_i32 = arith.constant 0 : i32
    %c0_i32_0 = arith.constant 0 : i32
    %c0_i32_1 = arith.constant 0 : i32
    return %arg0, %c0_i32, %c0_i32_0 : i32, i32, i32
  }
  func.func @transform_1(%arg0: i32) -> (i32, i32) {
    %c0_i32 = arith.constant 0 : i32
    %c0_i32_0 = arith.constant 0 : i32
    %c0_i32_1 = arith.constant 0 : i32
    return %c0_i32, %c0_i32_0 : i32, i32
  }
  func.func @transform_2(%arg0: i32) -> (i32, i32) {
    %c0_i32 = arith.constant 0 : i32
    %c0_i32_0 = arith.constant 0 : i32
    %c0_i32_1 = arith.constant 0 : i32
    return %c0_i32, %c0_i32_0 : i32, i32
  }
  func.func @transform_3(%arg0: i32) -> (i32, i32) {
    %c0_i32 = arith.constant 0 : i32
    %c0_i32_0 = arith.constant 0 : i32
    %c0_i32_1 = arith.constant 0 : i32
    return %c0_i32, %c0_i32_0 : i32, i32
  }
  func.func @transform_4(%arg0: i32) -> (i32, i32) {
    %c0_i32 = arith.constant 0 : i32
    %c0_i32_0 = arith.constant 0 : i32
    %c0_i32_1 = arith.constant 0 : i32
    return %c0_i32, %c0_i32_0 : i32, i32
  }
  func.func @transform_5(%arg0: i32) -> (i32, i32, i32) {
    %c0_i32 = arith.constant 0 : i32
    %c0_i32_0 = arith.constant 0 : i32
    %c0_i32_1 = arith.constant 0 : i32
    return %arg0, %c0_i32, %c0_i32_0 : i32, i32, i32
  }
}

</mosaic_0001>

<bundles_post_ra>
// kernel: tpu_custom_call.1
= control target key start
LH: loop header
LB: loop body
LE: loop exit
PB: predicated region body
PF: predicated region fallthrough
CT: control target
= control target key end

     0   :  { %10 = vsyncpa [#allocation3], 0  ;;  %s1058_s0 = inlined_call_operand.hbm [shape: f32[2,32,256], index: 0, kind: input, shape index: {}]   ;;  %s1059_s1 = inlined_call_operand.vmem [shape: f32[32,4], index: 1, kind: input, shape index: {}]   ;;  %s1060_s2 = inlined_call_operand.vmem [shape: f32[1,4], index: 2, kind: input, shape index: {}]   ;;  %s1061_s3 = inlined_call_operand.vmem [shape: f32[4,32], index: 3, kind: input, shape index: {}]   ;;  %s1062_s4 = inlined_call_operand.vmem [shape: f32[1,32], index: 4, kind: input, shape index: {}]   ;;  %s1063_s5 = inlined_call_operand.hbm [shape: f32[2,32,256], index: 5, kind: output, shape index: {}]  }
   0x1   :  { %12 = vsyncpa [#allocation3 + $0x1], 0 }
   0x2   :  { %13 = vsyncpa [#allocation4], 0 }
   0x3   :  { %15 = vsyncpa [#allocation4 + $0x1], 0  ;;  %s839_s18 = smov 0   ;;  %s841_s19 = smov 0  }
   0x4   :  { %s843_s20 = smov 0   ;;  %s845_s21 = smov 0  }
   0x5 LB: > { %s860_s22 = sadd.s32 4294967295, %s798_s21   ;;  %s591_s23 = sadd.s32 4294967294, %s798_s21   ;;  %s798_s21 = sphi %s845_s21, %s1076_s21   ;;  %s794_s20 = sphi %s843_s20, %s1075_s20   ;;  %s790_s19 = sphi %s841_s19, %s1074_s19   ;;  %s786_s18 = sphi %s839_s18, %s1073_s18  }
   0x6   : > { %s864_s24 = sadd.s32 1, %s798_s21   ;;  %s28_s25 = sadd.s32 1, %s794_s20 }
   0x7   : > { %s25_s26 = ssub.s32 %s798_s21, %s864_s24  ;;  %p35_p0 = scmp.ne.s32.totalorder %s794_s20, %s790_s19 }
   0x8   : > { %p26_p1 = scmp.eq.s32.totalorder %s25_s26, 0  ;;  %p36_p2 = scmp.eq.s32.totalorder %s798_s21, 0 }
   0x9   : > { %p41_p3 = scmp.ne.s32.totalorder %s790_s19, %s786_s18  ;;  %p42_p4 = scmp.eq.s32.totalorder %s860_s22, 0 }
   0xa   : > { %s876_s27 = scalar_select %p26_p1, %s794_s20, %s28_s25  }
   0xb   : > { %p878_p5 = por %p36_p2, %p35_p0  ;;  %p882_p6 = por %p42_p4, %p41_p3 }
   0xc   : > { %p149_p7 = scmp.eq.s32.totalorder %s860_s22, 1  ;;  %p155_p8 = scmp.eq.s32.totalorder %s591_s23, 1 }
   0xd   : > { %p653_p10 = scmp.lt.s32.totalorder %s798_s21, 2  ;;  %s187_s7 = sand.u32 1, %s794_s20  }
   0xe   : > { %p889_p11 = por %p149_p7, %p35_p0  ;;  %p893_p12 = por %p155_p8, %p41_p3 }
   0xf   : > { %s610_s8 = sshll.u32 %s798_s21, 10  ;;  %s594_s9 = sshll.u32 %s187_s7, 6 }
  0x10   : > { %s1067_s30 = scalar_select %p889_p11, 1, 0 }
  0x11   : > { %s1068_s6 = scalar_select %p893_p12, 1, 0 }
  0x12   : > { %s902_s12 = scalar_lea.hbm %s1058_s0, %s610_s8  ;;  %s191_s13 = scalar_lea.vmem [#allocation2], %s594_s9 }
  0x13   : > { %s198_s14 = sshll.u32 %s191_s13, 4  ;;  %p906_p13 = pnand %p653_p10, %p878_p5  ;;  %s910_s14 = int_to_ptr.vmem [resolvable:$true] %s198_s14 }
  0x14   : > { %s912_s16 = scalar_lea.sflag [#allocation3], %s187_s7  ;;  %s702_s17 = scalar_lea.hbm %s902_s12, 1024 }
  0x15   : > { %p703_p0 = scmp.ne.s32.totalorder %s902_s12, %s702_s17  ;;  %p704_p1 = pneg %p906_p13 }
  0x16   : > { %s707_s26 = scalar_lea.hbm %s1058_s0, 2048  ;;  %p708_p4 = scmp.lt.u32.totalorder %s902_s12, %s1058_s0 }
  0x17   : > { %p705_p2 = pnand %p704_p1, %p703_p0  ;;  %p709_p5 = scmp.lt.u32.totalorder %s707_s26, %s702_s17 }
  0x18   : > { %p711_p8 = scmp.lt.u32.totalorder %s702_s17, %s902_s12 }
  0x19   : > { %p706_p3 = pneg %p705_p2  ;;  %p710_p7 = por %p709_p5, %p708_p4 }
  0x1b   : > { %p712_p10 = por %p711_p8, %p710_p7 }
  0x1d   : > { %p713_p9 = pnand %p712_p10, %p706_p3 }
  0x1f   : > { %716 = shalt.err (!%p713_p9)
}
  0x20   : > { %s717_s7 = scalar_lea.vmem %s910_s14, 1024  ;;  %s800_s9 = smov [#allocation2]  }
  0x21   : > { %p718_p0 = scmp.ne.s32.totalorder %s910_s14, %s717_s7  ;;  %s722_s10 = sshll.u32 %s800_s9, 4  ;;  %s723_s10 = int_to_ptr.vmem [resolvable:$false] %s722_s10 }
  0x22   : > { %s724_s11 = scalar_lea.vmem %s723_s10, 2048  ;;  %p725_p11 = scmp.lt.s32.totalorder %s910_s14, %s723_s10 }
  0x23   : > { %p720_p2 = pnand %p718_p0, %p704_p1  ;;  %p726_p4 = scmp.lt.s32.totalorder %s724_s11, %s717_s7 }
  0x25   : > { %p721_p12 = pneg %p720_p2  ;;  %p727_p5 = por %p726_p4, %p725_p11 }
  0x27   : > { %p728_p7 = pnand %p727_p5, %p721_p12 }
  0x29   : > { %731 = shalt.err (!%p728_p7)
}
  0x2a   : > { %s801_s13 = smov 256   ;;  %s802_s17 = smov 16  }
  0x2b   : > { %648 = dma.hbm_to_vmem [thread:$0]  (!%p906_p13), %s902_s12, 1024, %s910_s14, %s912_s16, %s801_s13, %s801_s13, %s802_s17  }
  0x2c   : > { %p597_p9 = scmp.ge.s32.totalorder %s798_s21, 1  ;;  %p206_p1 = scmp.lt.s32.totalorder %s798_s21, 3 }
  0x2e   : > { %p207_p3 = pnand %p597_p9, %p206_p1 }
  0x2f   : > { %s943_s23 = sand.u32 (!%p207_p3), 1, %s790_s19  }
  0x30   : > { %210 = sbr.rel (%p207_p3) target bundleno = 836 (0x344), region = 40  ;;  %s598_s25 = sshll.u32 (!%p207_p3), %s943_s23, 6 }
  0x31   : > { %s213_s26 = scalar_lea.sflag (!%p207_p3), [#allocation3], %s943_s23  ;;  %s216_s28 = scalar_lea.vmem (!%p207_p3), [#allocation2], %s598_s25 }
  0x37   : > { %777 = dma.done.wait (%p882_p6), %s213_s26, 1024  }
  0x38   : > { %779 = vsyncadd (%p882_p6), %s213_s26, 4294966272  ;;  %v953_v0 = vld [vmem:[%s216_s28] sm:$0xff]  ;;  %v955_v1 = vld [vmem:[%s216_s28 + $0x8] sm:$0xff]  ;;  %v803_v15 = vmov 0.0|0.0   ;;  %vm804_vm0 = vmmov 0   ;;  %v805_v19 = vmov 0.0   ;;  %v276_v20 = vlaneseq }
  0x39   : > { %v957_v2 = vld [vmem:[%s216_s28 + $0x20] sm:$0xff]  ;;  %v251_v3 = vadd.f32 %v955_v1, %v953_v0  ;;  %v961_v4 = vld [vmem:[%s216_s28 + $0x28] sm:$0xff]  ;;  %v963_v5 = vld [vmem:[%s216_s28 + $0x10] sm:$0xff]  ;;  %635 = vmatprep.subr.bf16.mxu0 %v803_v15  ;;  %627 = vmatprep.mubr.msk.f32.mxu0 %vm804_vm0, %v805_v19  ;;  %vm287_vm1 = vcmask 130112   ;;  %vm294_vm2 = vcmask 195712   ;;  %vm301_vm3 = vcmask 261312  }
  0x3a   : > { %v965_v6 = vld [vmem:[%s216_s28 + $0x18] sm:$0xff]  ;;  %v257_v7 = vadd.f32 %v961_v4, %v957_v2  ;;  %v969_v8 = vld [vmem:[%s216_s28 + $0x30] sm:$0xff]  ;;  %v267_v12 = vld [vmem:[%s1059_s1] sm:$0xff]  ;;  %630 = vmatprep.subr.mxu1 %v805_v19  ;;  %632 = vmatprep.mubr.msk.f32.mxu1 %vm804_vm0, %v805_v19  ;;  %v277_v21 = vand.u32 127, %v276_v20  ;;  %v279_v22 = vshrl.u32 %v276_v20, 7  ;;  %vm303_vm4 = vcmask 261120  }
  0x3b   : > { %v971_v9 = vld [vmem:[%s216_s28 + $0x38] sm:$0xff]  ;;  %252 = vadd.xlane.f32.xlu0 %v251_v3  ;;  %v254_v10 = vadd.f32 %v965_v6, %v963_v5  ;;  %v268_v13 = vld [vmem:[%s1059_s1 + $0x8] sm:$0xff]  ;;  %v269_v16 = vld [vmem:[%s1059_s1 + $0x10] sm:$0xff]  ;;  %vm389_vm5 = vcmask 1043456   ;;  %vm385_vm6 = vcmask 31744   ;;  %s242_s29 = scalar_lea.vmem [#allocation5], %s598_s25 }
  0x3c   : > { %258 = vadd.xlane.f32.xlu1 %v257_v7  ;;  %v260_v11 = vadd.f32 %v971_v9, %v969_v8  ;;  %v636_v14 = vpack.c.bf16 %v268_v13, %v267_v12  ;;  %v270_v17 = vld [vmem:[%s1059_s1 + $0x18] sm:$0xff]  ;;  %v282_v23 = vadd.s32 4294967288, %v277_v21  ;;  %v289_v25 = vadd.s32 4294967280, %v277_v21  ;;  %v383_v45 = vld [vmem:[%s1061_s3] sm:$0xf]  ;;  %s518_s12 = sshll.u32 %s242_s29, 4  ;;  %s1007_s12 = int_to_ptr.vmem [resolvable:$true] %s518_s12 }
  0x3d   : > { %v639_v18 = vpack.c.bf16 %v270_v17, %v269_v16  ;;  %v296_v26 = vadd.s32 4294967272, %v277_v21  ;;  %v280_v28 = vsub.s32 %v277_v21, %v279_v22  ;;  %631 = vmatpush3.msk.msra.mxu1 %vm389_vm5, %v383_v45  ;;  %v271_v46 = vld [vmem:[%s1060_s2] sm:$0x1]  ;;  %v471_v62 = vsub.s32 0, %v279_v22  ;;  %s611_s14 = sshll.u32 %s860_s22, 10  ;;  %s505_s22 = scalar_lea.sflag [#allocation4], %s943_s23 }
  0x3e   : > { %637 = vmatpush3.bf16.msra.mxu0 %v636_v14  ;;  %v285_v30 = vsub.s32 %v282_v23, %v279_v22  ;;  %v292_v31 = vsub.s32 %v289_v25, %v279_v22  ;;  %v384_v55 = vld [vmem:[%s1062_s4] sm:$0x1]  ;;  %s1012_s16 = scalar_lea.hbm %s1063_s5, %s611_s14  ;;  %s732_s8 = scalar_lea.vmem %s1007_s12, 1024 }
  0x3f   : > { %255 = vadd.xlane.f32.xlu0 %v254_v10  ;;  %638 = vmatprep.subr.bf16.mxu0 %v803_v15  ;;  %v299_v34 = vsub.s32 %v296_v26, %v279_v22  ;;  %p733_p6 = scmp.ne.s32.totalorder %s1007_s12, %s732_s8  ;;  %p1070_p11 = scmp.ne.s32.totalorder %s1067_s30, 0 }
  0x40   : > { %261 = vadd.xlane.f32.xlu1 %v260_v11  ;;  %s806_s7 = smov [#allocation5]  }
  0x41   : > { %p734_p12 = pnand %p733_p6, %p1070_p11  ;;  %s736_s9 = sshll.u32 %s806_s7, 4  ;;  %s737_s9 = int_to_ptr.vmem [resolvable:$false] %s736_s9 }
  0x42   : > { %640 = vmatpush3.bf16.msra.mxu0 %v639_v18  ;;  %s738_s10 = scalar_lea.vmem %s737_s9, 2048  ;;  %p739_p8 = scmp.lt.s32.totalorder %s1007_s12, %s737_s9 }
  0x43   : > { %p735_p13 = pneg %p734_p12  ;;  %p740_p10 = scmp.lt.s32.totalorder %s738_s10, %s732_s8 }
  0x45   : > { %p741_p0 = por %p740_p10, %p739_p8 }
  0x47   : > { %p742_p2 = pnand %p741_p0, %p735_p13 }
  0xc8   : > { %v253_v24 = vpop.xlane.xlu0 %252 }
  0xc9   : > { %v259_v27 = vpop.xlane.xlu1 %258  ;;  %v263_v29 = vmul.f32 0.00390625, %v253_v24 }
  0xca   : > { %v265_v32 = vmul.f32 0.00390625, %v259_v27 }
  0xcb   : > { %v281_v38 = vrot.slane %v263_v29, %v280_v28 }
  0xcc   : > { %v256_v33 = vpop.xlane.xlu0 %255  ;;  %v293_v40 = vrot.slane %v265_v32, %v292_v31 }
  0xcd   : > { %v264_v35 = vmul.f32 0.00390625, %v256_v33  ;;  %v262_v36 = vpop.xlane.xlu1 %261 }
  0xce   : > { %v266_v37 = vmul.f32 0.00390625, %v262_v36 }
  0xcf   : > { %v286_v39 = vrot.slane %v264_v35, %v285_v30 }
  0xd0   : > { %v300_v41 = vrot.slane %v266_v37, %v299_v34 }
  0xd1   : > { %v288_v42 = vsel %vm287_vm1, %v286_v39, %v281_v38 }
  0xd2   : > { %v295_v43 = vsel %vm294_vm2, %v293_v40, %v288_v42 }
  0xd3   : > { %v302_v44 = vsel %vm301_vm3, %v300_v41, %v295_v43 }
  0xd4   : > { %628 = vmatmul.mubr.msk.f32.vlgmr.msra.gmra.mrb[0].mxu0 %vm303_vm4, %v302_v44 }
 0x1a7   : > { %v372_v47 = vpop.f32.mrb[0].mxu0 }
 0x1a8   : > { %v373_v48 = vadd.f32 %v372_v47, %v271_v46  ;;  %v629_v49 = vpop.f32.mrb[1].mxu0 }
 0x1aa   : > { %v601_v50 = vmul.f32 -1.442695, %v373_v48 }
 0x1ac   : > { %694 = vpow2.f32 %v601_v50 }
 0x1b6   : > { %v695_v51 = vpop.eup %694 }
 0x1b7   : > { %v379_v52 = vadd.f32 1.0, %v695_v51 }
 0x1b9   : > { %696 = vrcp.f32 %v379_v52 }
 0x1c3   : > { %v697_v53 = vpop.eup %696 }
 0x1c4   : > { %v382_v54 = vmul.f32 %v697_v53, %v373_v48 }
 0x1c6   : > { %633 = vmatmul.mubr.msk.f32.vlgmr.msra.gmra.mrb[0].mxu1 %vm385_vm6, %v382_v54 }
 0x299   : > { %v459_v56 = vpop.f32.mrb[0].mxu1 }
 0x29a   : > { %v460_v57 = vadd.f32 %v459_v56, %v384_v55  ;;  %v634_v58 = vpop.f32.mrb[1].mxu1 }
 0x29c   : > { %v604_v59 = vmul.f32 -1.442695, %v460_v57 }
 0x29e   : > { %698 = vpow2.f32 %v604_v59 }
 0x2a8   : > { %v699_v60 = vpop.eup %698 }
 0x2a9   : > { %v466_v61 = vadd.f32 1.0, %v699_v60 }
 0x2ab   : > { %700 = vrcp.f32 %v466_v61 }
 0x2b5   : > { %v701_v63 = vpop.eup %700 }
 0x2b6   : > { %v472_v3 = vrot.slane %v701_v63, %v471_v62 }
 0x2b8   : > { %478 = vbcast.lane.b32.xlu1 %v472_v3, 264  ;;  %474 = vbcast.lane.b32.xlu0 %v472_v3, 256 }
 0x2bc   : > { %482 = vbcast.lane.b32.xlu1 %v472_v3, 272 }
 0x2c0   : > { %486 = vbcast.lane.b32.xlu1 %v472_v3, 280 }
 0x32a   : > { %v479_v7 = vpop.permute.xlu1 %478  ;;  %v475_v10 = vpop.permute.xlu0 %474 }
 0x32b   : > { %v490_v11 = vmul.f32 %v479_v7, %v963_v5  ;;  %v491_v12 = vmul.f32 %v479_v7, %v965_v6  ;;  %v488_v13 = vmul.f32 %v475_v10, %v953_v0  ;;  %v489_v14 = vmul.f32 %v475_v10, %v955_v1 }
 0x32d   : > { %498 = vst [vmem:[%s242_s29 + $0x10] sm:$0xff] %v490_v11  ;;  %499 = vst [vmem:[%s242_s29 + $0x18] sm:$0xff] %v491_v12 }
 0x32e   : > { %496 = vst [vmem:[%s242_s29] sm:$0xff] %v488_v13  ;;  %497 = vst [vmem:[%s242_s29 + $0x8] sm:$0xff] %v489_v14  ;;  %v483_v15 = vpop.permute.xlu1 %482 }
 0x32f   : > { %v492_v16 = vmul.f32 %v483_v15, %v957_v2  ;;  %v493_v5 = vmul.f32 %v483_v15, %v961_v4 }
 0x331   : > { %500 = vst [vmem:[%s242_s29 + $0x20] sm:$0xff] %v492_v16  ;;  %501 = vst [vmem:[%s242_s29 + $0x28] sm:$0xff] %v493_v5 }
 0x332   : > { %v487_v0 = vpop.permute.xlu1 %486 }
 0x333   : > { %v494_v1 = vmul.f32 %v487_v0, %v969_v8  ;;  %v495_v2 = vmul.f32 %v487_v0, %v971_v9 }
 0x335   : > { %502 = vst [vmem:[%s242_s29 + $0x30] sm:$0xff] %v494_v1  ;;  %503 = vst [vmem:[%s242_s29 + $0x38] sm:$0xff] %v495_v2 }
 0x336   : > { %745 = shalt.err (!%p742_p2)
}
 0x337   : > { %s746_s11 = scalar_lea.hbm %s1012_s16, 1024  ;;  %s750_s26 = scalar_lea.hbm %s1063_s5, 2048 }
 0x338   : > { %p747_p4 = scmp.ne.s32.totalorder %s1012_s16, %s746_s11  ;;  %p751_p9 = scmp.lt.u32.totalorder %s1012_s16, %s1063_s5 }
 0x339   : > { %p752_p1 = scmp.lt.u32.totalorder %s750_s26, %s746_s11  ;;  %p754_p6 = scmp.lt.u32.totalorder %s746_s11, %s1012_s16 }
 0x33a   : > { %p748_p5 = pnand %p747_p4, %p1070_p11 }
 0x33b   : > { %p753_p3 = por %p752_p1, %p751_p9 }
 0x33c   : > { %p749_p7 = pneg %p748_p5 }
 0x33d   : > { %p755_p12 = por %p754_p6, %p753_p3 }
 0x33f   : > { %p756_p13 = pnand %p755_p12, %p749_p7 }
 0x341   : > { %759 = shalt.err (!%p756_p13)
}
 0x342   : > { %s807_s14 = smov 256   ;;  %s808_s25 = smov 16  }
 0x343   : > { %643 = dma.vmem_to_hbm [thread:$0]  (%p1070_p11), %s1007_s12, 1024, %s1012_s16, %s505_s22, %s807_s14, %s807_s14, %s808_s25  }
 0x344 PF: > { %s533_s15 = sand.u32 1, %s786_s18   ;;  %p1071_p8 = scmp.ne.s32.totalorder %s1068_s6, 0 }
 0x345   : > { %p1072_p10 = scmp.ge.s32.totalorder %s798_s21, 2  ;;  %s534_s8 = scalar_lea.sflag [#allocation4], %s533_s15 }
 0x347   : > { %p650_p0 = pnand %p1072_p10, %p1071_p8 }
 0x349   : > { %781 = dma.done.wait (!%p650_p0), %s534_s8, 1024  }
 0x34a   : > { %783 = vsyncadd (!%p650_p0), %s534_s8, 4294966272  ;;  %p18_p2 = scmp.ge.s32.totalorder %s864_s24, 4   ;;  %s1073_s18 = smov %s790_s19 }
 0x34b   : > { %s1074_s19 = smov %s794_s20  ;;  %s1075_s20 = smov %s876_s27 }
 0x34c   : > { %s1076_s21 = smov %s864_s24  ;;  %20 = sbr.rel (!%p18_p2) target bundleno = 5 (0x5), region = 85 }
 0x353   :  { %539 = vsyncpa [#allocation3], 1 }
 0x354   :  { %541 = vsyncpa [#allocation3 + $0x1], 1 }
 0x355   :  { %542 = vsyncpa [#allocation4], 1 }
 0x356   :  { %544 = vsyncpa [#allocation4 + $0x1], 1 }

</bundles_post_ra>
